<compile_context>
chip_gen: v5e
topology: v5e:2x2
jax: 0.10.0
libtpu: 0.0.40
codegen_flags: <defaults>
</compile_context>

<pallas_src>
import functools

import jax
import jax.numpy as jnp
from jax import lax
from jax.experimental import pallas as pl
from jax.experimental.pallas import tpu as pltpu


def _as_i32(v):
    """Python int -> two's-complement int32-representable value."""
    v &= 0xFFFFFFFF
    return v - (1 << 32) if v >= (1 << 31) else v


_GOLDEN = _as_i32(0x9E3779B9)
_LAYER_SALT = _as_i32(0x85EBCA6B)
_MIX1 = _as_i32(0x7FEB352D)
_MIX2 = _as_i32(0x846CA68B)


def _random_bits(shape, seed, global_row0, layer):
    """Stateless counter-based int32 bits (splitmix32-style finalizer).

    Uses only portable jnp/lax integer ops (pure VPU work on TPU, also runs under
    the Pallas interpreter) — unlike pltpu.prng_* which has no CPU/interpret
    lowering and crashed the previous version.
    """
    row = lax.broadcasted_iota(jnp.int32, shape, 0) + global_row0
    col = lax.broadcasted_iota(jnp.int32, shape, 1)
    x = row * jnp.int32(shape[1]) + col
    x = x + seed * jnp.int32(_GOLDEN) + jnp.int32(layer) * jnp.int32(_LAYER_SALT)
    x = (x ^ lax.shift_right_logical(x, 16)) * jnp.int32(_MIX1)
    x = (x ^ lax.shift_right_logical(x, 15)) * jnp.int32(_MIX2)
    return x ^ lax.shift_right_logical(x, 16)


def _dropout(h, p, seed, global_row0, layer):
    """Inverted dropout via integer-threshold compare (no shift/convert/fmul chain)."""
    bits = _random_bits(h.shape, seed, global_row0, layer)
    # bits is ~uniform over the full signed int32 range; keep with prob (1 - p).
    thr = min(int(round(p * 4294967296.0)) - 2147483648, 2147483647)
    keep = bits >= jnp.int32(thr)
    return jnp.where(keep, h * (1.0 / (1.0 - p)), 0.0)


def _mlp_kernel(seed_ref, x_ref, w1_ref, b1_ref, w2_ref, b2_ref, w3t_ref, b3_ref,
                o_ref, *, p, training, tb):
    apply_dropout = training and p > 0.0
    seed = seed_ref[0]
    global_row0 = pl.program_id(0) * tb  # per-tile PRNG salt (unique mask per tile)

    # Layer 1: Linear(2, 128) + ReLU.  K=2 is a pathological MXU shape, so do it
    # on the VPU as two broadcast FMAs (broadcasts hoisted, done once).
    x = x_ref[...]                       # (tb, 2)
    w1 = w1_ref[...]                     # (2, 128)
    h = x[:, 0:1] * w1[0:1, :] + x[:, 1:2] * w1[1:2, :] + b1_ref[...]
    h = jnp.maximum(h, 0.0)

    if apply_dropout:
        h = _dropout(h, p, seed, global_row0, layer=0)

    # Layer 2: Linear(128, 128) + ReLU — the only real FLOP consumer.
    # bf16 operands on the MXU, f32 accumulation (w2 is pre-cast to bf16).
    h = jnp.dot(h.astype(jnp.bfloat16), w2_ref[...],
                preferred_element_type=jnp.float32)
    h = jnp.maximum(h + b2_ref[...], 0.0)

    if apply_dropout:
        h = _dropout(h, p, seed, global_row0, layer=1)

    # Layer 3: Linear(128, 1) + ReLU.  N=1 wastes the MXU; VPU mul + XLU lane reduce.
    out = jnp.sum(h * w3t_ref[...], axis=-1, keepdims=True) + b3_ref[...]
    o_ref[...] = jnp.maximum(out, 0.0).astype(o_ref.dtype)


def _round_up(x, m):
    return (x + m - 1) // m * m


def mlp_forward(x, params, *, drop_out_rate, training, seed=0, block_batch=512):
    """Pallas TPU forward pass equivalent to CreateModel.forward."""
    w1, b1, w2, b2, w3, b3 = params
    n = x.shape[0]

    # Batch tile: multiple of 8 sublanes, capped so VMEM stays small (double
    # buffering included) and the grid pipelines / spreads across TensorCores.
    tb = min(block_batch, _round_up(n, 8))
    grid = (pl.cdiv(n, tb),)

    seed_arr = jnp.asarray([seed], dtype=jnp.int32)
    w2_bf16 = w2.astype(jnp.bfloat16)    # narrow the dominant matmul operand
    w3t = jnp.transpose(w3)              # (1, 128) lane-dense row for the VPU reduce

    kernel = functools.partial(_mlp_kernel, p=float(drop_out_rate),
                               training=bool(training), tb=tb)

    tile_map = lambda i, seed_ref: (i, 0)   # batch-tiled operands
    resident = lambda i, seed_ref: (0, 0)   # weights/biases stay VMEM-resident

    grid_spec = pltpu.PrefetchScalarGridSpec(
        num_scalar_prefetch=1,
        grid=grid,
        in_specs=[
            pl.BlockSpec((tb, 2), tile_map),       # x
            pl.BlockSpec((2, 128), resident),      # w1
            pl.BlockSpec((1, 128), resident),      # b1
            pl.BlockSpec((128, 128), resident),    # w2 (bf16)
            pl.BlockSpec((1, 128), resident),      # b2
            pl.BlockSpec((1, 128), resident),      # w3^T
            pl.BlockSpec((1, 1), resident),        # b3
        ],
        out_specs=pl.BlockSpec((tb, 1), tile_map),
    )

    flops = 2 * n * (2 * 128 + 128 * 128 + 128)
    bytes_accessed = (x.size * 4 + n * 4 + w1.size * 4 + b1.size * 4
                      + w2.size * 2 + b2.size * 4 + w3.size * 4 + b3.size * 4)

    return pl.pallas_call(
        kernel,
        out_shape=jax.ShapeDtypeStruct((n, 1), jnp.float32),
        grid_spec=grid_spec,
        compiler_params=pltpu.CompilerParams(
            dimension_semantics=("parallel",),
            vmem_limit_bytes=32 * 1024 * 1024,
        ),
        cost_estimate=pl.CostEstimate(flops=flops, transcendentals=0,
                                      bytes_accessed=bytes_accessed),
    )(seed_arr, x, w1, b1, w2_bf16, b2, w3t, b3)


def init_params(key):
    """Deterministic parameter init matching nn.Linear shapes.
    Weights stored as (in_features, out_features)."""
    k1, k2, k3, k4, k5, k6 = jax.random.split(key, 6)

    def linear(kw, kb, fan_in, fan_out):
        bound = 1.0 / jnp.sqrt(fan_in)
        w = jax.random.uniform(kw, (fan_in, fan_out), jnp.float32, -bound, bound)
        b = jax.random.uniform(kb, (1, fan_out), jnp.float32, -bound, bound)
        return w, b

    w1, b1 = linear(k1, k2, 2, 128)
    w2, b2 = linear(k3, k4, 128, 128)
    w3, b3 = linear(k5, k6, 128, 1)
    return (w1, b1, w2, b2, w3, b3)


def reference_eval(x, params):
    """Pure-JAX reference for eval mode (dropout = identity).  Mirrors the
    kernel's intentional bf16 narrowing of the layer-2 matmul."""
    w1, b1, w2, b2, w3, b3 = params
    h = jnp.maximum(x @ w1 + b1, 0.0)
    h = jnp.dot(h.astype(jnp.bfloat16), w2.astype(jnp.bfloat16),
                preferred_element_type=jnp.float32)
    h = jnp.maximum(h + b2, 0.0)
    h = jnp.maximum(h @ w3 + b3, 0.0)
    return h


if __name__ == "__main__":
    key = jax.random.PRNGKey(0)
    kp, kx = jax.random.split(key)

    params = init_params(kp)
    batch = 8
    x = jax.random.normal(kx, (batch, 2), dtype=jnp.float32)

    drop_out_rate = 0.5

    # Eval-mode run (dropout disabled) — check against pure-JAX reference.
    y_eval = mlp_forward(x, params, drop_out_rate=drop_out_rate, training=False)
    y_eval = jax.block_until_ready(y_eval)
    y_ref = reference_eval(x, params)
    assert y_eval.shape == (batch, 1)
    assert jnp.allclose(y_eval, y_ref, atol=2e-3, rtol=2e-3), "eval-mode mismatch"

    # Training-mode run (dropout active via stateless in-kernel PRNG).
    y_train = mlp_forward(x, params, drop_out_rate=drop_out_rate,
                          training=True, seed=1234)
    y_train = jax.block_until_ready(y_train)
    assert y_train.shape == (batch, 1)
    assert bool(jnp.all(y_train >= 0.0))        # final ReLU
    assert bool(jnp.all(jnp.isfinite(y_train)))

    print("KERNEL_OK")
</pallas_src>

<mosaic_0001>
module attributes {stable_mosaic.version = 11 : i64} {
  func.func @_mlp_kernel(%arg0: i32, %arg1: memref<1xi32, #tpu.memory_space<smem>>, %arg2: memref<8x2xf32, #tpu.memory_space<vmem>>, %arg3: memref<2x128xf32, #tpu.memory_space<vmem>>, %arg4: memref<1x128xf32, #tpu.memory_space<vmem>>, %arg5: memref<128x128xbf16, #tpu.memory_space<vmem>>, %arg6: memref<1x128xf32, #tpu.memory_space<vmem>>, %arg7: memref<1x128xf32, #tpu.memory_space<vmem>>, %arg8: memref<1x1xf32, #tpu.memory_space<vmem>>, %arg9: memref<8x1xf32, #tpu.memory_space<vmem>>) attributes {dimension_semantics = [#tpu.dimension_semantics<parallel>], iteration_bounds = array<i64: 1>, scalar_prefetch = 1 : i64, scratch_operands = 0 : i64, tpu.core_type = #tpu.core_type<tc>, window_params = [{transform_indices = @transform_0, window_bounds = array<i64: 8, 2>}, {pipeline_mode = #tpu.pipeline_mode<synchronous>, transform_indices = @transform_1, window_bounds = array<i64: 2, 128>}, {pipeline_mode = #tpu.pipeline_mode<synchronous>, transform_indices = @transform_2, window_bounds = array<i64: 1, 128>}, {pipeline_mode = #tpu.pipeline_mode<synchronous>, transform_indices = @transform_3, window_bounds = array<i64: 128, 128>}, {pipeline_mode = #tpu.pipeline_mode<synchronous>, transform_indices = @transform_4, window_bounds = array<i64: 1, 128>}, {pipeline_mode = #tpu.pipeline_mode<synchronous>, transform_indices = @transform_5, window_bounds = array<i64: 1, 128>}, {pipeline_mode = #tpu.pipeline_mode<synchronous>, transform_indices = @transform_6, window_bounds = array<i64: 1, 1>}, {transform_indices = @transform_7, window_bounds = array<i64: 8, 1>}]} {
    %c0 = arith.constant 0 : index
    %c0_0 = arith.constant 0 : index
    %0 = vector.load %arg2[%c0, %c0_0] : memref<8x2xf32, #tpu.memory_space<vmem>>, vector<8x2xf32>
    %c0_1 = arith.constant 0 : index
    %c0_2 = arith.constant 0 : index
    %1 = vector.load %arg3[%c0_1, %c0_2] : memref<2x128xf32, #tpu.memory_space<vmem>>, vector<2x128xf32>
    %2 = vector.extract_strided_slice %0 {offsets = [0, 0], sizes = [8, 1], strides = [1, 1]} : vector<8x2xf32> to vector<8x1xf32>
    %3 = vector.extract_strided_slice %1 {offsets = [0, 0], sizes = [1, 128], strides = [1, 1]} : vector<2x128xf32> to vector<1x128xf32>
    %4 = vector.broadcast %2 : vector<8x1xf32> to vector<8x128xf32>
    %5 = vector.broadcast %3 : vector<1x128xf32> to vector<8x128xf32>
    %6 = arith.mulf %4, %5 : vector<8x128xf32>
    %7 = vector.extract_strided_slice %0 {offsets = [0, 1], sizes = [8, 1], strides = [1, 1]} : vector<8x2xf32> to vector<8x1xf32>
    %8 = vector.extract_strided_slice %1 {offsets = [1, 0], sizes = [1, 128], strides = [1, 1]} : vector<2x128xf32> to vector<1x128xf32>
    %9 = vector.broadcast %7 : vector<8x1xf32> to vector<8x128xf32>
    %10 = vector.broadcast %8 : vector<1x128xf32> to vector<8x128xf32>
    %11 = arith.mulf %9, %10 : vector<8x128xf32>
    %12 = arith.addf %6, %11 : vector<8x128xf32>
    %c0_3 = arith.constant 0 : index
    %c0_4 = arith.constant 0 : index
    %13 = vector.load %arg4[%c0_3, %c0_4] : memref<1x128xf32, #tpu.memory_space<vmem>>, vector<1x128xf32>
    %14 = vector.broadcast %13 : vector<1x128xf32> to vector<8x128xf32>
    %15 = arith.addf %12, %14 : vector<8x128xf32>
    %cst = arith.constant 0.000000e+00 : f32
    %16 = vector.broadcast %cst : f32 to vector<8x128xf32>
    %17 = arith.maximumf %15, %16 : vector<8x128xf32>
    %18 = arith.truncf %17 : vector<8x128xf32> to vector<8x128xbf16>
    %c0_5 = arith.constant 0 : index
    %c0_6 = arith.constant 0 : index
    %19 = vector.load %arg5[%c0_5, %c0_6] : memref<128x128xbf16, #tpu.memory_space<vmem>>, vector<128x128xbf16>
    %cst_7 = arith.constant dense<0.000000e+00> : vector<8x128xf32>
    %20 = tpu.matmul %18, %19, %cst_7 {dimension_numbers = #tpu.dot_dimension_numbers<[1], [0], [0], [1], [0, 0, 1, 1], [], []>} : vector<8x128xbf16>, vector<128x128xbf16>, vector<8x128xf32> -> vector<8x128xf32>
    %c0_8 = arith.constant 0 : index
    %c0_9 = arith.constant 0 : index
    %21 = vector.load %arg6[%c0_8, %c0_9] : memref<1x128xf32, #tpu.memory_space<vmem>>, vector<1x128xf32>
    %22 = vector.broadcast %21 : vector<1x128xf32> to vector<8x128xf32>
    %23 = arith.addf %20, %22 : vector<8x128xf32>
    %cst_10 = arith.constant 0.000000e+00 : f32
    %24 = vector.broadcast %cst_10 : f32 to vector<8x128xf32>
    %25 = arith.maximumf %23, %24 : vector<8x128xf32>
    %c0_11 = arith.constant 0 : index
    %c0_12 = arith.constant 0 : index
    %26 = vector.load %arg7[%c0_11, %c0_12] : memref<1x128xf32, #tpu.memory_space<vmem>>, vector<1x128xf32>
    %27 = vector.broadcast %26 : vector<1x128xf32> to vector<8x128xf32>
    %28 = arith.mulf %25, %27 : vector<8x128xf32>
    %cst_13 = arith.constant dense<0.000000e+00> : vector<8xf32>
    %29 = vector.multi_reduction <add>, %28, %cst_13 [1] : vector<8x128xf32> to vector<8xf32>
    %30 = vector.shape_cast %29 : vector<8xf32> to vector<8x1xf32>
    %c0_14 = arith.constant 0 : index
    %c0_15 = arith.constant 0 : index
    %31 = vector.load %arg8[%c0_14, %c0_15] : memref<1x1xf32, #tpu.memory_space<vmem>>, vector<1x1xf32>
    %32 = vector.broadcast %31 : vector<1x1xf32> to vector<8x1xf32>
    %33 = arith.addf %30, %32 : vector<8x1xf32>
    %cst_16 = arith.constant 0.000000e+00 : f32
    %34 = vector.broadcast %cst_16 : f32 to vector<8x1xf32>
    %35 = arith.maximumf %33, %34 : vector<8x1xf32>
    %c0_17 = arith.constant 0 : index
    %c0_18 = arith.constant 0 : index
    %36 = vector.load %arg9[%c0_17, %c0_18] : memref<8x1xf32, #tpu.memory_space<vmem>>, vector<8x1xf32>
    tpu.vector_store %arg9[%c0_17, %c0_18], %35 {strides = array<i32>} : memref<8x1xf32, #tpu.memory_space<vmem>>, vector<8x1xf32>,
    return
  }
  func.func @transform_0(%arg0: i32, %arg1: memref<1xi32, #tpu.memory_space<smem>>) -> (i32, i32) {
    %c0_i32 = arith.constant 0 : i32
    %c0_i32_0 = arith.constant 0 : i32
    return %arg0, %c0_i32 : i32, i32
  }
  func.func @transform_1(%arg0: i32, %arg1: memref<1xi32, #tpu.memory_space<smem>>) -> (i32, i32) {
    %c0_i32 = arith.constant 0 : i32
    %c0_i32_0 = arith.constant 0 : i32
    %c0_i32_1 = arith.constant 0 : i32
    return %c0_i32, %c0_i32_0 : i32, i32
  }
  func.func @transform_2(%arg0: i32, %arg1: memref<1xi32, #tpu.memory_space<smem>>) -> (i32, i32) {
    %c0_i32 = arith.constant 0 : i32
    %c0_i32_0 = arith.constant 0 : i32
    %c0_i32_1 = arith.constant 0 : i32
    return %c0_i32, %c0_i32_0 : i32, i32
  }
  func.func @transform_3(%arg0: i32, %arg1: memref<1xi32, #tpu.memory_space<smem>>) -> (i32, i32) {
    %c0_i32 = arith.constant 0 : i32
    %c0_i32_0 = arith.constant 0 : i32
    %c0_i32_1 = arith.constant 0 : i32
    return %c0_i32, %c0_i32_0 : i32, i32
  }
  func.func @transform_4(%arg0: i32, %arg1: memref<1xi32, #tpu.memory_space<smem>>) -> (i32, i32) {
    %c0_i32 = arith.constant 0 : i32
    %c0_i32_0 = arith.constant 0 : i32
    %c0_i32_1 = arith.constant 0 : i32
    return %c0_i32, %c0_i32_0 : i32, i32
  }
  func.func @transform_5(%arg0: i32, %arg1: memref<1xi32, #tpu.memory_space<smem>>) -> (i32, i32) {
    %c0_i32 = arith.constant 0 : i32
    %c0_i32_0 = arith.constant 0 : i32
    %c0_i32_1 = arith.constant 0 : i32
    return %c0_i32, %c0_i32_0 : i32, i32
  }
  func.func @transform_6(%arg0: i32, %arg1: memref<1xi32, #tpu.memory_space<smem>>) -> (i32, i32) {
    %c0_i32 = arith.constant 0 : i32
    %c0_i32_0 = arith.constant 0 : i32
    %c0_i32_1 = arith.constant 0 : i32
    return %c0_i32, %c0_i32_0 : i32, i32
  }
  func.func @transform_7(%arg0: i32, %arg1: memref<1xi32, #tpu.memory_space<smem>>) -> (i32, i32) {
    %c0_i32 = arith.constant 0 : i32
    %c0_i32_0 = arith.constant 0 : i32
    return %arg0, %c0_i32 : i32, i32
  }
}

</mosaic_0001>

<bundles_post_ra>
// kernel: tpu_custom_call.1
= control target key start
LH: loop header
LB: loop body
LE: loop exit
PB: predicated region body
PF: predicated region fallthrough
CT: control target
= control target key end

     0   :  { %s322_s0 = inlined_call_operand.<no memory space> [shape: s32[1], index: 0, kind: input, shape index: {}]   ;;  %s323_s1 = inlined_call_operand.vmem [shape: f32[8,2], index: 1, kind: input, shape index: {}]   ;;  %s324_s2 = inlined_call_operand.vmem [shape: f32[2,128], index: 2, kind: input, shape index: {}]   ;;  %s325_s3 = inlined_call_operand.vmem [shape: f32[1,128], index: 3, kind: input, shape index: {}]   ;;  %s326_s4 = inlined_call_operand.hbm [shape: bf16[128,128], index: 4, kind: input, shape index: {}]   ;;  %s327_s5 = inlined_call_operand.vmem [shape: f32[1,128], index: 5, kind: input, shape index: {}]   ;;  %s328_s6 = inlined_call_operand.vmem [shape: f32[1,128], index: 6, kind: input, shape index: {}]   ;;  %s329_s7 = inlined_call_operand.<no memory space> [shape: f32[1,1], index: 7, kind: input, shape index: {}]   ;;  %s330_s8 = inlined_call_operand.vmem [shape: f32[8,1], index: 8, kind: output, shape index: {}]  }
   0x1   :  { %v14_v0 = vstv %s329_s7 }
   0x2   :  { %15 = vst [vmem:[#allocation4] sm:$0x1] %v14_v0 }
   0x3   :  { %16 = vsyncpa [#allocation6], 0  ;;  %s27_s30 = sshll.u32 %s326_s4, 4  ;;  %s248_s9 = smov [#allocation5]   ;;  %s28_s30 = int_to_ptr.hbm [resolvable:$true] %s27_s30 }
   0x4   :  { %s29_s10 = sshll.u32 %s248_s9, 4  ;;  %s249_s11 = smov 64   ;;  %s30_s10 = int_to_ptr.vmem [resolvable:$true] %s29_s10 }
   0x5   :  { %s250_s12 = smov 4  }
   0x6   :  { %35 = dma.hbm_to_vmem [thread:$0]  %s28_s30, 1024, %s30_s10, [#allocation6], %s249_s11, %s249_s11, %s250_s12  }
   0x7   :  { %246 = dma.done.wait [#allocation6], 1024  }
   0x8   :  { %247 = vsyncadd [#allocation6], 4294966272  ;;  %v251_v1 = vmov 0   ;;  %v46_v2 = vld [vmem:[%s323_s1] sm:$0xff]  ;;  %v209_v4 = vld [vmem:[#allocation5 + $0x30] sm:$0xff]  ;;  %v252_v6 = vmov 1  }
   0x9   :  { %216 = vset.pattern.permute.xlu0 %v251_v1  ;;  %v210_v3 = vld [vmem:[#allocation5 + $0x38] sm:$0xff]  ;;  %v208_v5 = vld [vmem:[#allocation5 + $0x28] sm:$0xff]  ;;  %v207_v7 = vld [vmem:[#allocation5 + $0x20] sm:$0xff]  ;;  %vm164_vm0 = vcmask 7168  }
   0xa   :  { %50 = vperm.xlu0 %216, %v46_v2   ;;  %137 = vmatpush.bf16.msra.mxu0 %v210_v3  ;;  %v206_v8 = vld [vmem:[#allocation5 + $0x18] sm:$0xff]  ;;  %v205_v9 = vld [vmem:[#allocation5 + $0x10] sm:$0xff]  ;;  %v204_v10 = vld [vmem:[#allocation5 + $0x8] sm:$0xff] }
   0xb   :  { %v203_v11 = vld [vmem:[#allocation5] sm:$0xff]  ;;  %v218_v19 = vld [vmem:[%s325_s3] ss:$0 sm:$0xff] }
   0xc   :  { %v47_v13 = vld [vmem:[%s324_s2] sm:$0x3] }
   0xd   :  { %v53_v14 = vperm.slane %v47_v13, 0  ;;  %v59_v15 = vperm.slane %v47_v13, 1  ;;  %v219_v24 = vld [vmem:[%s327_s5] ss:$0 sm:$0xff] }
   0xe   :  { %138 = vmatpush.bf16.msra.mxu0 %v209_v4  ;;  %v220_v27 = vld [vmem:[%s328_s6] ss:$0 sm:$0xff] }
   0xf   :  { %v221_v31 = vld [vmem:[#allocation4] ss:$0 sm:$0xff] }
  0x12   :  { %217 = vset.pattern.permute.xlu0 %v252_v6  ;;  %139 = vmatpush.bf16.msra.mxu0 %v208_v5 }
  0x13   :  { %56 = vperm.xlu0 %217, %v46_v2  }
  0x16   :  { %140 = vmatpush.bf16.msra.mxu0 %v207_v7 }
  0x1a   :  { %141 = vmatpush.bf16.msra.mxu0 %v206_v8 }
  0x1e   :  { %142 = vmatpush.bf16.msra.mxu0 %v205_v9 }
  0x22   :  { %143 = vmatpush.bf16.msra.mxu0 %v204_v10 }
  0x26   :  { %144 = vmatpush.bf16.msra.mxu0 %v203_v11 }
  0x7c   :  { %v51_v12 = vpop.permute.xlu0 %50 }
  0x7d   :  { %v54_v17 = vmul.f32 %v53_v14, %v51_v12 }
  0x85   :  { %v57_v16 = vpop.permute.xlu0 %56 }
  0x86   :  { %v60_v18 = vmul.f32 %v59_v15, %v57_v16 }
  0x88   :  { %v61_v20 = vadd.f32 %v60_v18, %v54_v17 }
  0x8a   :  { %v66_v21 = vadd.f32 %v218_v19, %v61_v20 }
  0x8c   :  { %v67_v22 = vmax.f32 %v66_v21, 0.0 }
  0x8e   :  { %v68_v23 = vpack.c.bf16 %v67_v22, %v67_v22 }
  0x90   :  { %145 = vmatmul.bf16.vlgmr.msra.gmra.mxu0 %v68_v23 }
 0x10d   :  { %v146_v25 = vpop.f32.mrf.mxu0 }
 0x10e   :  { %v147_v26 = vadd.f32 %v219_v24, %v146_v25 }
 0x110   :  { %v150_v28 = vmax.f32 %v147_v26, 0.0 }
 0x112   :  { %v155_v29 = vmul.f32 %v220_v27, %v150_v28 }
 0x114   :  { %156 = vadd.xlane.f32.xlu1 %v155_v29 }
 0x115   :  { %v148_v30 = vpop.f32.mrf.mxu0 }
 0x187   :  { %v157_v32 = vpop.xlane.xlu1 %156 }
 0x188   :  { %v162_v33 = vadd.f32 %v221_v31, %v157_v32 }
 0x18a   :  { %v163_v34 = vmax.f32 %v162_v33, 0.0 }
 0x18c   :  { %165 = vst.msk [vmem:[%s330_s8] sm:$0xff] %vm164_vm0, %v163_v34 }
 0x18d   :  { %170 = vsyncpa [#allocation6], 1 }

</bundles_post_ra>
